<compile_context>
chip_gen: v5e
topology: v5e:2x2
jax: 0.10.0
libtpu: 0.0.40
codegen_flags: <defaults>
</compile_context>

<pallas_src>
import functools

import jax
import jax.numpy as jnp
from jax.experimental import pallas as pl
from jax.experimental.pallas import tpu as pltpu

LANE = 128
SUBLANE = 8
SUB_ROWS = 256          # rows per in-kernel reduction sub-chunk (256x128 f32 = 128 KiB)


def _cdiv(a, b):
    return -(-a // b)


def _tile_config():
    """(max_tile_rows, vmem_limit_bytes) chosen per TPU generation."""
    try:
        vmem_bytes = int(pltpu.get_tpu_info().vmem_capacity_bytes)
        if vmem_bytes >= 96 * 1024 * 1024:
            # v5e / v6e: 128 MiB physical VMEM -> 3 f32 operands x 2 buffers = 48 MiB.
            return 16384, 64 * 1024 * 1024
    except Exception:
        pass
    # v7x (64 MiB per TensorCore) or unknown: keep the input footprint ~24 MiB.
    return 8192, 48 * 1024 * 1024


def _mask_l1_kernel(x_ref, gt_ref, m_ref, abs_out_ref, msk_out_ref, *,
                    tile_rows, blocks_per_chunk, total_rows, needs_row_mask):
    p = pl.program_id(0)          # parallel row chunk (sharded across TCs on v7x)
    k = pl.program_id(1)          # sequential reduction step within the chunk

    @pl.when(k == 0)
    def _init():
        abs_out_ref[...] = jnp.zeros_like(abs_out_ref)
        msk_out_ref[...] = jnp.zeros_like(msk_out_ref)

    gb = p * blocks_per_chunk + k          # UNCLAMPED global block index
    block_row0 = gb * tile_rows            # global row index of this block's first row
    n_sub = tile_rows // SUB_ROWS

    def reduce_tile(masked):
        def body(c, carry):
            r0 = pl.multiple_of(c * SUB_ROWS, SUB_ROWS)
            # Native-dtype loads; cast to f32 on the VPU.
            x = x_ref[pl.ds(r0, SUB_ROWS), :].astype(jnp.float32)
            g = gt_ref[pl.ds(r0, SUB_ROWS), :].astype(jnp.float32)
            m = m_ref[pl.ds(r0, SUB_ROWS), :].astype(jnp.float32)
            diff = jnp.abs(x - g) * m
            msk = m
            if masked:
                # Edge block: rows past the logical array carry garbage (the
                # DMA is clamped); replace them via a SELECT, not a multiply,
                # so NaN garbage cannot leak into the sums.
                row_ids = jax.lax.broadcasted_iota(jnp.int32, (SUB_ROWS, 1), 0)
                valid = (block_row0 + r0 + row_ids) < total_rows
                diff = jnp.where(valid, diff, 0.0)
                msk = jnp.where(valid, msk, 0.0)
            # Cross-vreg partial reduce (VPU adds only) straight into the
            # resident (8, 128) output block for this parallel chunk.
            abs_out_ref[...] += diff.reshape(SUB_ROWS // SUBLANE, SUBLANE, LANE).sum(axis=0)
            msk_out_ref[...] += msk.reshape(SUB_ROWS // SUBLANE, SUBLANE, LANE).sum(axis=0)
            return carry

        jax.lax.fori_loop(0, n_sub, body, 0)

    if needs_row_mask:
        # Only edge blocks (ragged last block / clamped overhang blocks) pay
        # for the iota + selects; interior blocks run the mask-free path.
        is_edge = (gb + 1) * tile_rows > total_rows

        @pl.when(jnp.logical_not(is_edge))
        def _interior():
            reduce_tile(False)

        @pl.when(is_edge)
        def _edge():
            reduce_tile(True)
    else:
        reduce_tile(False)


def mask_l1_loss(x, gt, mask, *, max_tile_rows=None, vmem_limit_bytes=None):
    """loss = sum(|x - gt| * mask) / sum(mask)   (scalar, float32).

    x / gt / mask may be any dtypes (e.g. bf16 x/gt, int8 mask); they stream
    through the DMA at native width and are cast to f32 inside the kernel.
    Faithful to the PyTorch module: no eps, so an all-zero mask yields NaN/Inf.
    """
    n = x.size
    auto_rows, auto_vmem = _tile_config()
    if max_tile_rows is None:
        max_tile_rows = auto_rows
    if vmem_limit_bytes is None:
        vmem_limit_bytes = auto_vmem
    max_tile_rows = max(SUB_ROWS, (max_tile_rows // SUB_ROWS) * SUB_ROWS)

    # Lane-dense (rows, 128) view.  Only the rare n % 128 != 0 case pays for a
    # padded copy (mask pads with zeros -> no effect on either sum); all other
    # raggedness is handled in-kernel, NOT by padding.
    pad = (-n) % LANE

    def prep(a):
        flat = a.reshape(-1)                    # free (row-major)
        if pad:
            flat = jnp.pad(flat, (0, pad))      # rare path; <128 pad elements
        return flat.reshape(-1, LANE)           # free

    xf, gf, mf = prep(x), prep(gt), prep(mask)
    rows = xf.shape[0]

    tile_rows = min(max_tile_rows, _cdiv(rows, SUB_ROWS) * SUB_ROWS)
    num_blocks = _cdiv(rows, tile_rows)

    # Leading parallel axis: 2 row chunks so both v7x TensorCores stream half
    # the data each (no-op on single-TC v5e/v6e).
    num_chunks = 2 if num_blocks >= 2 else 1
    blocks_per_chunk = _cdiv(num_blocks, num_chunks)
    # True iff some grid step touches rows >= `rows` (ragged last block and/or
    # clamped overhang steps when num_chunks * blocks_per_chunk > num_blocks).
    needs_row_mask = (num_chunks * blocks_per_chunk * tile_rows != rows)

    def in_index(p, k):
        # Clamp so overhang grid steps re-read the last real block; their rows
        # are fully masked out in-kernel and contribute exactly zero.
        return (jnp.minimum(p * blocks_per_chunk + k, num_blocks - 1), 0)

    in_spec = pl.BlockSpec((tile_rows, LANE), in_index)
    out_spec = pl.BlockSpec((None, SUBLANE, LANE), lambda p, k: (p, 0, 0))

    kernel = functools.partial(
        _mask_l1_kernel,
        tile_rows=tile_rows,
        blocks_per_chunk=blocks_per_chunk,
        total_rows=rows,
        needs_row_mask=needs_row_mask,
    )

    in_bytes = (xf.size * xf.dtype.itemsize + gf.size * gf.dtype.itemsize
                + mf.size * mf.dtype.itemsize)
    out_bytes = 2 * num_chunks * SUBLANE * LANE * 4
    cost = pl.CostEstimate(flops=5 * n, transcendentals=0,
                           bytes_accessed=in_bytes + out_bytes)

    part_abs, part_msk = pl.pallas_call(
        kernel,
        out_shape=(
            jax.ShapeDtypeStruct((num_chunks, SUBLANE, LANE), jnp.float32),
            jax.ShapeDtypeStruct((num_chunks, SUBLANE, LANE), jnp.float32),
        ),
        grid_spec=pltpu.PrefetchScalarGridSpec(
            num_scalar_prefetch=0,
            grid=(num_chunks, blocks_per_chunk),
            in_specs=[in_spec, in_spec, in_spec],
            out_specs=(out_spec, out_spec),
        ),
        compiler_params=pltpu.CompilerParams(
            dimension_semantics=("parallel", "arbitrary"),
            vmem_limit_bytes=vmem_limit_bytes,
        ),
        cost_estimate=cost,
    )(xf, gf, mf)

    # Tiny (num_chunks, 8, 128) partials -> scalar combine + divide in XLA.
    return jnp.sum(part_abs) / jnp.sum(part_msk)


def mask_l1_loss_ref(x, gt, mask):
    """Pure-JAX reference matching the PyTorch forward."""
    x = x.astype(jnp.float32)
    gt = gt.astype(jnp.float32)
    mask = mask.astype(jnp.float32)
    return jnp.sum(jnp.abs(x - gt) * mask) / jnp.sum(mask)


if __name__ == "__main__":
    key = jax.random.PRNGKey(0)
    k1, k2, k3 = jax.random.split(key, 3)

    # 1) Primary check: NCHW f32 inputs, same convention as the PyTorch module.
    B, C, H, W = 2, 4, 16, 16
    x = jax.random.normal(k1, (B, C, H, W), dtype=jnp.float32)
    gt = jax.random.normal(k2, (B, C, H, W), dtype=jnp.float32)
    mask = (jax.random.uniform(k3, (B, C, H, W)) > 0.5).astype(jnp.float32)
    out = jax.block_until_ready(mask_l1_loss(x, gt, mask))
    ref = jax.block_until_ready(mask_l1_loss_ref(x, gt, mask))
    assert jnp.allclose(out, ref, rtol=1e-5, atol=1e-6), (out, ref)

    # 2) Ragged element count (exercises the rare n % 128 != 0 pad path).
    shape2 = (2, 3, 15, 17)
    x2 = jax.random.normal(k1, shape2, dtype=jnp.float32)
    gt2 = jax.random.normal(k2, shape2, dtype=jnp.float32)
    m2 = (jax.random.uniform(k3, shape2) > 0.5).astype(jnp.float32)
    out2 = jax.block_until_ready(mask_l1_loss(x2, gt2, m2))
    ref2 = jax.block_until_ready(mask_l1_loss_ref(x2, gt2, m2))
    assert jnp.allclose(out2, ref2, rtol=1e-5, atol=1e-6), (out2, ref2)

    # 3) Multi-block / dual-chunk path: a small max_tile_rows forces the full
    #    (parallel, arbitrary) grid with multi-step accumulation, a ragged edge
    #    block and a clamped overhang step.
    shape3 = (1, 3, 320, 320)       # 307200 elems -> 2400 rows
    x3 = jax.random.normal(k1, shape3, dtype=jnp.float32)
    gt3 = jax.random.normal(k2, shape3, dtype=jnp.float32)
    m3 = (jax.random.uniform(k3, shape3) > 0.5).astype(jnp.float32)
    out3 = jax.block_until_ready(mask_l1_loss(x3, gt3, m3, max_tile_rows=512))
    ref3 = jax.block_until_ready(mask_l1_loss_ref(x3, gt3, m3))
    assert jnp.allclose(out3, ref3, rtol=1e-4, atol=1e-5), (out3, ref3)

    # 4) Narrow dtypes stream through the DMA natively (bf16 x/gt, int8 mask).
    shape4 = (2, 4, 64, 64)         # 32768 elems -> exactly one 256-row tile
    x4 = jax.random.normal(k1, shape4, dtype=jnp.bfloat16)
    gt4 = jax.random.normal(k2, shape4, dtype=jnp.bfloat16)
    m4 = (jax.random.uniform(k3, shape4) > 0.5).astype(jnp.int8)
    out4 = jax.block_until_ready(mask_l1_loss(x4, gt4, m4))
    ref4 = jax.block_until_ready(mask_l1_loss_ref(x4, gt4, m4))
    assert jnp.allclose(out4, ref4, rtol=1e-4, atol=1e-5), (out4, ref4)

    print("KERNEL_OK")
</pallas_src>

<mosaic_0001>
module attributes {stable_mosaic.version = 11 : i64} {
  func.func @_mask_l1_kernel(%arg0: i32, %arg1: i32, %arg2: memref<256x128xf32, #tpu.memory_space<vmem>>, %arg3: memref<256x128xf32, #tpu.memory_space<vmem>>, %arg4: memref<256x128xf32, #tpu.memory_space<vmem>>, %arg5: memref<1x8x128xf32, #tpu.memory_space<vmem>>, %arg6: memref<1x8x128xf32, #tpu.memory_space<vmem>>) attributes {dimension_semantics = [#tpu.dimension_semantics<parallel>, #tpu.dimension_semantics<arbitrary>], iteration_bounds = array<i64: 1, 1>, scalar_prefetch = 0 : i64, scratch_operands = 0 : i64, tpu.core_type = #tpu.core_type<tc>, window_params = [{transform_indices = @transform_0, window_bounds = array<i64: 256, 128>}, {transform_indices = @transform_1, window_bounds = array<i64: 256, 128>}, {transform_indices = @transform_2, window_bounds = array<i64: 256, 128>}, {transform_indices = @transform_3, window_bounds = array<i64: 1, 8, 128>}, {transform_indices = @transform_4, window_bounds = array<i64: 1, 8, 128>}]} {
    %c0_i32 = arith.constant 0 : i32
    %0 = arith.cmpi eq, %arg1, %c0_i32 : i32
    %1 = arith.extui %0 : i1 to i32
    %c0_i32_0 = arith.constant 0 : i32
    %2 = arith.cmpi ne, %1, %c0_i32_0 : i32
    scf.if %2 {
      %cst = arith.constant 0.000000e+00 : f32
      %14 = vector.broadcast %cst : f32 to vector<8x128xf32>
      %c0 = arith.constant 0 : index
      %c0_5 = arith.constant 0 : index
      %c0_6 = arith.constant 0 : index
      %15 = vector.load %arg5[%c0, %c0_5, %c0_6] : memref<1x8x128xf32, #tpu.memory_space<vmem>>, vector<1x8x128xf32>
      %16 = vector.shape_cast %15 : vector<1x8x128xf32> to vector<8x128xf32>
      %17 = vector.shape_cast %14 : vector<8x128xf32> to vector<1x8x128xf32>
      tpu.vector_store %arg5[%c0, %c0_5, %c0_6], %17 {strides = array<i32>} : memref<1x8x128xf32, #tpu.memory_space<vmem>>, vector<1x8x128xf32>,
      %cst_7 = arith.constant 0.000000e+00 : f32
      %18 = vector.broadcast %cst_7 : f32 to vector<8x128xf32>
      %c0_8 = arith.constant 0 : index
      %c0_9 = arith.constant 0 : index
      %c0_10 = arith.constant 0 : index
      %19 = vector.load %arg6[%c0_8, %c0_9, %c0_10] : memref<1x8x128xf32, #tpu.memory_space<vmem>>, vector<1x8x128xf32>
      %20 = vector.shape_cast %19 : vector<1x8x128xf32> to vector<8x128xf32>
      %21 = vector.shape_cast %18 : vector<8x128xf32> to vector<1x8x128xf32>
      tpu.vector_store %arg6[%c0_8, %c0_9, %c0_10], %21 {strides = array<i32>} : memref<1x8x128xf32, #tpu.memory_space<vmem>>, vector<1x8x128xf32>,
    } else {
    }
    %c1_i32 = arith.constant 1 : i32
    %3 = arith.muli %arg0, %c1_i32 : i32
    %4 = arith.addi %3, %arg1 : i32
    %c256_i32 = arith.constant 256 : i32
    %5 = arith.muli %4, %c256_i32 : i32
    %c1_i32_1 = arith.constant 1 : i32
    %6 = arith.addi %4, %c1_i32_1 : i32
    %c256_i32_2 = arith.constant 256 : i32
    %7 = arith.muli %6, %c256_i32_2 : i32
    %c16_i32 = arith.constant 16 : i32
    %8 = arith.cmpi sgt, %7, %c16_i32 : i32
    %true = arith.constant true
    %9 = arith.xori %8, %true : i1
    %10 = arith.extui %9 : i1 to i32
    %c0_i32_3 = arith.constant 0 : i32
    %11 = arith.cmpi ne, %10, %c0_i32_3 : i32
    scf.if %11 {
      %c0_i32_5 = arith.constant 0 : i32
      %c256_i32_6 = arith.constant 256 : i32
      %14 = arith.muli %c0_i32_5, %c256_i32_6 : i32
      %15 = tpu.assume_multiple %14, 256 : i32
      %16 = arith.index_cast %15 : i32 to index
      %c0 = arith.constant 0 : index
      %17 = vector.load %arg2[%16, %c0] : memref<256x128xf32, #tpu.memory_space<vmem>>, vector<256x128xf32>
      %18 = arith.index_cast %15 : i32 to index
      %c0_7 = arith.constant 0 : index
      %19 = vector.load %arg3[%18, %c0_7] : memref<256x128xf32, #tpu.memory_space<vmem>>, vector<256x128xf32>
      %20 = arith.index_cast %15 : i32 to index
      %c0_8 = arith.constant 0 : index
      %21 = vector.load %arg4[%20, %c0_8] : memref<256x128xf32, #tpu.memory_space<vmem>>, vector<256x128xf32>
      %22 = arith.subf %17, %19 : vector<256x128xf32>
      %23 = math.absf %22 : vector<256x128xf32>
      %24 = arith.mulf %23, %21 : vector<256x128xf32>
      %c0_9 = arith.constant 0 : index
      %c0_10 = arith.constant 0 : index
      %c0_11 = arith.constant 0 : index
      %25 = vector.load %arg5[%c0_9, %c0_10, %c0_11] : memref<1x8x128xf32, #tpu.memory_space<vmem>>, vector<1x8x128xf32>
      %26 = vector.shape_cast %25 : vector<1x8x128xf32> to vector<8x128xf32>
      %27 = vector.shape_cast %24 : vector<256x128xf32> to vector<32x8x128xf32>
      %cst = arith.constant dense<0.000000e+00> : vector<8x128xf32>
      %28 = vector.multi_reduction <add>, %27, %cst [0] : vector<32x8x128xf32> to vector<8x128xf32>
      %29 = arith.addf %26, %28 : vector<8x128xf32>
      %c0_12 = arith.constant 0 : index
      %c0_13 = arith.constant 0 : index
      %c0_14 = arith.constant 0 : index
      %30 = vector.load %arg5[%c0_12, %c0_13, %c0_14] : memref<1x8x128xf32, #tpu.memory_space<vmem>>, vector<1x8x128xf32>
      %31 = vector.shape_cast %30 : vector<1x8x128xf32> to vector<8x128xf32>
      %32 = vector.shape_cast %29 : vector<8x128xf32> to vector<1x8x128xf32>
      tpu.vector_store %arg5[%c0_12, %c0_13, %c0_14], %32 {strides = array<i32>} : memref<1x8x128xf32, #tpu.memory_space<vmem>>, vector<1x8x128xf32>,
      %c0_15 = arith.constant 0 : index
      %c0_16 = arith.constant 0 : index
      %c0_17 = arith.constant 0 : index
      %33 = vector.load %arg6[%c0_15, %c0_16, %c0_17] : memref<1x8x128xf32, #tpu.memory_space<vmem>>, vector<1x8x128xf32>
      %34 = vector.shape_cast %33 : vector<1x8x128xf32> to vector<8x128xf32>
      %35 = vector.shape_cast %21 : vector<256x128xf32> to vector<32x8x128xf32>
      %cst_18 = arith.constant dense<0.000000e+00> : vector<8x128xf32>
      %36 = vector.multi_reduction <add>, %35, %cst_18 [0] : vector<32x8x128xf32> to vector<8x128xf32>
      %37 = arith.addf %34, %36 : vector<8x128xf32>
      %c0_19 = arith.constant 0 : index
      %c0_20 = arith.constant 0 : index
      %c0_21 = arith.constant 0 : index
      %38 = vector.load %arg6[%c0_19, %c0_20, %c0_21] : memref<1x8x128xf32, #tpu.memory_space<vmem>>, vector<1x8x128xf32>
      %39 = vector.shape_cast %38 : vector<1x8x128xf32> to vector<8x128xf32>
      %40 = vector.shape_cast %37 : vector<8x128xf32> to vector<1x8x128xf32>
      tpu.vector_store %arg6[%c0_19, %c0_20, %c0_21], %40 {strides = array<i32>} : memref<1x8x128xf32, #tpu.memory_space<vmem>>, vector<1x8x128xf32>,
      %c1_i32_22 = arith.constant 1 : i32
    } else {
    }
    %12 = arith.extui %8 : i1 to i32
    %c0_i32_4 = arith.constant 0 : i32
    %13 = arith.cmpi ne, %12, %c0_i32_4 : i32
    scf.if %13 {
      %c0_i32_5 = arith.constant 0 : i32
      %c256_i32_6 = arith.constant 256 : i32
      %14 = arith.muli %c0_i32_5, %c256_i32_6 : i32
      %15 = tpu.assume_multiple %14, 256 : i32
      %16 = arith.index_cast %15 : i32 to index
      %c0 = arith.constant 0 : index
      %17 = vector.load %arg2[%16, %c0] : memref<256x128xf32, #tpu.memory_space<vmem>>, vector<256x128xf32>
      %18 = arith.index_cast %15 : i32 to index
      %c0_7 = arith.constant 0 : index
      %19 = vector.load %arg3[%18, %c0_7] : memref<256x128xf32, #tpu.memory_space<vmem>>, vector<256x128xf32>
      %20 = arith.index_cast %15 : i32 to index
      %c0_8 = arith.constant 0 : index
      %21 = vector.load %arg4[%20, %c0_8] : memref<256x128xf32, #tpu.memory_space<vmem>>, vector<256x128xf32>
      %22 = arith.subf %17, %19 : vector<256x128xf32>
      %23 = math.absf %22 : vector<256x128xf32>
      %24 = arith.mulf %23, %21 : vector<256x128xf32>
      %25 = tpu.iota {dimensions = array<i32: 0>} : vector<256x1xi32>
      %26 = arith.addi %5, %15 : i32
      %27 = vector.broadcast %26 : i32 to vector<256x1xi32>
      %28 = arith.addi %27, %25 : vector<256x1xi32>
      %c16_i32_9 = arith.constant 16 : i32
      %29 = vector.broadcast %c16_i32_9 : i32 to vector<256x1xi32>
      %30 = arith.cmpi slt, %28, %29 : vector<256x1xi32>
      %cst = arith.constant 0.000000e+00 : f32
      %31 = vector.shape_cast %30 : vector<256x1xi1> to vector<256x1xi1>
      %32 = vector.broadcast %31 : vector<256x1xi1> to vector<256x128xi1>
      %33 = vector.broadcast %cst : f32 to vector<256x128xf32>
      %34 = arith.select %32, %24, %33 : vector<256x128xi1>, vector<256x128xf32>
      %cst_10 = arith.constant 0.000000e+00 : f32
      %35 = vector.shape_cast %30 : vector<256x1xi1> to vector<256x1xi1>
      %36 = vector.broadcast %35 : vector<256x1xi1> to vector<256x128xi1>
      %37 = vector.broadcast %cst_10 : f32 to vector<256x128xf32>
      %38 = arith.select %36, %21, %37 : vector<256x128xi1>, vector<256x128xf32>
      %c0_11 = arith.constant 0 : index
      %c0_12 = arith.constant 0 : index
      %c0_13 = arith.constant 0 : index
      %39 = vector.load %arg5[%c0_11, %c0_12, %c0_13] : memref<1x8x128xf32, #tpu.memory_space<vmem>>, vector<1x8x128xf32>
      %40 = vector.shape_cast %39 : vector<1x8x128xf32> to vector<8x128xf32>
      %41 = vector.shape_cast %34 : vector<256x128xf32> to vector<32x8x128xf32>
      %cst_14 = arith.constant dense<0.000000e+00> : vector<8x128xf32>
      %42 = vector.multi_reduction <add>, %41, %cst_14 [0] : vector<32x8x128xf32> to vector<8x128xf32>
      %43 = arith.addf %40, %42 : vector<8x128xf32>
      %c0_15 = arith.constant 0 : index
      %c0_16 = arith.constant 0 : index
      %c0_17 = arith.constant 0 : index
      %44 = vector.load %arg5[%c0_15, %c0_16, %c0_17] : memref<1x8x128xf32, #tpu.memory_space<vmem>>, vector<1x8x128xf32>
      %45 = vector.shape_cast %44 : vector<1x8x128xf32> to vector<8x128xf32>
      %46 = vector.shape_cast %43 : vector<8x128xf32> to vector<1x8x128xf32>
      tpu.vector_store %arg5[%c0_15, %c0_16, %c0_17], %46 {strides = array<i32>} : memref<1x8x128xf32, #tpu.memory_space<vmem>>, vector<1x8x128xf32>,
      %c0_18 = arith.constant 0 : index
      %c0_19 = arith.constant 0 : index
      %c0_20 = arith.constant 0 : index
      %47 = vector.load %arg6[%c0_18, %c0_19, %c0_20] : memref<1x8x128xf32, #tpu.memory_space<vmem>>, vector<1x8x128xf32>
      %48 = vector.shape_cast %47 : vector<1x8x128xf32> to vector<8x128xf32>
      %49 = vector.shape_cast %38 : vector<256x128xf32> to vector<32x8x128xf32>
      %cst_21 = arith.constant dense<0.000000e+00> : vector<8x128xf32>
      %50 = vector.multi_reduction <add>, %49, %cst_21 [0] : vector<32x8x128xf32> to vector<8x128xf32>
      %51 = arith.addf %48, %50 : vector<8x128xf32>
      %c0_22 = arith.constant 0 : index
      %c0_23 = arith.constant 0 : index
      %c0_24 = arith.constant 0 : index
      %52 = vector.load %arg6[%c0_22, %c0_23, %c0_24] : memref<1x8x128xf32, #tpu.memory_space<vmem>>, vector<1x8x128xf32>
      %53 = vector.shape_cast %52 : vector<1x8x128xf32> to vector<8x128xf32>
      %54 = vector.shape_cast %51 : vector<8x128xf32> to vector<1x8x128xf32>
      tpu.vector_store %arg6[%c0_22, %c0_23, %c0_24], %54 {strides = array<i32>} : memref<1x8x128xf32, #tpu.memory_space<vmem>>, vector<1x8x128xf32>,
      %c1_i32_25 = arith.constant 1 : i32
    } else {
    }
    return
  }
  func.func @transform_0(%arg0: i32, %arg1: i32) -> (i32, i32) {
    %c1_i32 = arith.constant 1 : i32
    %0 = arith.muli %arg0, %c1_i32 : i32
    %1 = arith.addi %0, %arg1 : i32
    %c0_i32 = arith.constant 0 : i32
    %2 = arith.minsi %1, %c0_i32 : i32
    %c0_i32_0 = arith.constant 0 : i32
    %c0_i32_1 = arith.constant 0 : i32
    return %2, %c0_i32_0 : i32, i32
  }
  func.func @transform_1(%arg0: i32, %arg1: i32) -> (i32, i32) {
    %c1_i32 = arith.constant 1 : i32
    %0 = arith.muli %arg0, %c1_i32 : i32
    %1 = arith.addi %0, %arg1 : i32
    %c0_i32 = arith.constant 0 : i32
    %2 = arith.minsi %1, %c0_i32 : i32
    %c0_i32_0 = arith.constant 0 : i32
    %c0_i32_1 = arith.constant 0 : i32
    return %2, %c0_i32_0 : i32, i32
  }
  func.func @transform_2(%arg0: i32, %arg1: i32) -> (i32, i32) {
    %c1_i32 = arith.constant 1 : i32
    %0 = arith.muli %arg0, %c1_i32 : i32
    %1 = arith.addi %0, %arg1 : i32
    %c0_i32 = arith.constant 0 : i32
    %2 = arith.minsi %1, %c0_i32 : i32
    %c0_i32_0 = arith.constant 0 : i32
    %c0_i32_1 = arith.constant 0 : i32
    return %2, %c0_i32_0 : i32, i32
  }
  func.func @transform_3(%arg0: i32, %arg1: i32) -> (i32, i32, i32) {
    %c0_i32 = arith.constant 0 : i32
    %c0_i32_0 = arith.constant 0 : i32
    %c0_i32_1 = arith.constant 0 : i32
    return %arg0, %c0_i32, %c0_i32_0 : i32, i32, i32
  }
  func.func @transform_4(%arg0: i32, %arg1: i32) -> (i32, i32, i32) {
    %c0_i32 = arith.constant 0 : i32
    %c0_i32_0 = arith.constant 0 : i32
    %c0_i32_1 = arith.constant 0 : i32
    return %arg0, %c0_i32, %c0_i32_0 : i32, i32, i32
  }
}

</mosaic_0001>

<bundles_post_ra>
// kernel: tpu_custom_call.1
= control target key start
LH: loop header
LB: loop body
LE: loop exit
PB: predicated region body
PF: predicated region fallthrough
CT: control target
= control target key end

     0   :  { %10 = vsyncpa [#allocation3], 0  ;;  %s1104_s0 = inlined_call_operand.hbm [shape: f32[16,128], index: 0, kind: input, shape index: {}]   ;;  %s1105_s1 = inlined_call_operand.hbm [shape: f32[16,128], index: 1, kind: input, shape index: {}]   ;;  %s1106_s2 = inlined_call_operand.hbm [shape: f32[16,128], index: 2, kind: input, shape index: {}]   ;;  %s1107_s3 = inlined_call_operand.hbm [shape: f32[1,8,128], index: 3, kind: output, shape index: {0}]   ;;  %s1108_s4 = inlined_call_operand.hbm [shape: f32[1,8,128], index: 4, kind: output, shape index: {1}]  }
   0x1   :  { %11 = vsyncpa [#allocation6], 0 }
   0x2   :  { %12 = vsyncpa [#allocation4], 0 }
   0x3   :  { %13 = vsyncpa [#allocation10], 0 }
   0x4   :  { %24 = vsyncadd [#allocation3], 3840  ;;  %s29_s17 = sshll.u32 %s1104_s0, 4  ;;  %s1057_s18 = smov [#allocation2]   ;;  %s30_s17 = int_to_ptr.hbm [resolvable:$true] %s29_s17 }
   0x5   :  { %s31_s19 = sshll.u32 %s1057_s18, 4  ;;  %s1058_s20 = smov 128   ;;  %s32_s19 = int_to_ptr.vmem [resolvable:$true] %s31_s19 }
   0x6   :  { %s1059_s21 = smov 8  }
   0x7   :  { %37 = dma.hbm_to_vmem [thread:$0]  %s30_s17, 256, %s32_s19, [#allocation3], %s1058_s20, %s1058_s20, %s1059_s21  }
   0x8   :  { %48 = vsyncadd [#allocation6], 3840  ;;  %s53_s24 = sshll.u32 %s1105_s1, 4  ;;  %s1060_s25 = smov [#allocation5]   ;;  %s54_s24 = int_to_ptr.hbm [resolvable:$true] %s53_s24 }
   0x9   :  { %s55_s26 = sshll.u32 %s1060_s25, 4  ;;  %s56_s26 = int_to_ptr.vmem [resolvable:$true] %s55_s26 }
   0xa   :  { %61 = dma.hbm_to_vmem [thread:$0]  %s54_s24, 256, %s56_s26, [#allocation6], %s1058_s20, %s1058_s20, %s1059_s21  }
   0xb   :  { %72 = vsyncadd [#allocation6], 3840  ;;  %s77_s28 = sshll.u32 %s1106_s2, 4  ;;  %s1061_s29 = smov [#allocation7]   ;;  %s78_s28 = int_to_ptr.hbm [resolvable:$true] %s77_s28 }
   0xc   :  { %s79_s30 = sshll.u32 %s1061_s29, 4  ;;  %s80_s30 = int_to_ptr.vmem [resolvable:$true] %s79_s30 }
   0xd   :  { %85 = dma.hbm_to_vmem [thread:$0]  %s78_s28, 256, %s80_s30, [#allocation6], %s1058_s20, %s1058_s20, %s1059_s21  }
   0xe   :  { %1049 = dma.done.wait [#allocation3], 4096  }
   0xf   :  { %1050 = vsyncadd [#allocation3], 4294963200 }
  0x10   :  { %1051 = dma.done.wait [#allocation6], 8192  }
  0x11   :  { %1052 = vsyncadd [#allocation6], 4294959104  ;;  %v394_v0 = vld [vmem:[#allocation2] sm:$0xff]  ;;  %v395_v1 = vld [vmem:[#allocation2 + $0x8] sm:$0xff]  ;;  %s1062_s1 = smov [#allocation9]   ;;  %s899_s7 = sshll.u32 %s1108_s4, 4  ;;  %s900_s7 = int_to_ptr.hbm [resolvable:$true] %s899_s7 }
  0x12   :  { %v426_v2 = vld [vmem:[#allocation5] sm:$0xff]  ;;  %v427_v3 = vld [vmem:[#allocation5 + $0x8] sm:$0xff]  ;;  %s897_s5 = sshll.u32 %s1062_s1, 4  ;;  %s1063_s8 = smov [#allocation8]   ;;  %s898_s5 = int_to_ptr.vmem [resolvable:$true] %s897_s5 }
  0x13   :  { %v458_v4 = vld [vmem:[#allocation7] sm:$0xff]  ;;  %v459_v5 = vld [vmem:[#allocation7 + $0x8] sm:$0xff]  ;;  %v490_v6 = vsub.f32 %v394_v0, %v426_v2  ;;  %v491_v7 = vsub.f32 %v395_v1, %v427_v3  ;;  %s886_s9 = sshll.u32 %s1063_s8, 4  ;;  %s888_s12 = sshll.u32 %s1107_s3, 4  ;;  %s887_s9 = int_to_ptr.vmem [resolvable:$true] %s886_s9  ;;  %s889_s12 = int_to_ptr.hbm [resolvable:$true] %s888_s12 }
  0x14   :  { %v848_v8 = vadd.f32 %v459_v5, %v458_v4 }
  0x15   :  { %v522_v9 = vand.u32 2147483647, %v490_v6  ;;  %v523_v10 = vand.u32 2147483647, %v491_v7 }
  0x16   :  { %880 = vst [vmem:[#allocation9] sm:$0xff] %v848_v8 }
  0x17   :  { %v554_v11 = vmul.f32 %v522_v9, %v458_v4  ;;  %v555_v12 = vmul.f32 %v523_v10, %v459_v5  ;;  %902 = dma.vmem_to_hbm [thread:$0]  %s898_s5, 128, %s900_s7, [#allocation10]  }
  0x19   :  { %v814_v13 = vadd.f32 %v555_v12, %v554_v11 }
  0x1b   :  { %846 = vst [vmem:[#allocation8] sm:$0xff] %v814_v13 }
  0x1c   :  { %891 = dma.vmem_to_hbm [thread:$0]  %s887_s9, 128, %s889_s12, [#allocation4]  }
  0x1d   :  { %1053 = dma.done.wait [#allocation4], 128  }
  0x1e   :  { %1054 = vsyncadd [#allocation4], 4294967168 }
  0x1f   :  { %1055 = dma.done.wait [#allocation10], 128  }
  0x20   :  { %1056 = vsyncadd [#allocation10], 4294967168 }
  0x21   :  { %911 = vsyncpa [#allocation3], 1 }
  0x22   :  { %912 = vsyncpa [#allocation6], 1 }
  0x23   :  { %913 = vsyncpa [#allocation4], 1 }
  0x24   :  { %914 = vsyncpa [#allocation10], 1 }

</bundles_post_ra>
